<compile_context>
chip_gen: v6e
topology: v6e:2x2x1
jax: 0.10.0
libtpu: 0.0.40
codegen_flags: <defaults>
</compile_context>

<pallas_src>
import jax
import jax.numpy as jnp
from jax.experimental import pallas as pl
from jax.experimental.pallas import tpu as pltpu

# ----- small, module-consistent sizes -----
B = 2                  # batch
H = W = 16             # spatial
RGB_SEQ = 3            # rgb_seq_length -> rgb input channels = 3 * RGB_SEQ
OF_SEQ = 4             # of_seq_length  -> of  input channels = 2 * OF_SEQ
CIN_RGB = RGB_SEQ * 3  # 9
CIN_OF = OF_SEQ * 2    # 8
FEAT = 16              # stand-in backbone conv feature width (per stream)
NB_CLASSES = 8         # nb_classes
NUM_FC = 64            # num_fc

M = B * H * W          # flattened conv rows (512)
K_RGB = 9 * CIN_RGB    # 81  (real im2col contraction, rgb)
K_OF = 9 * CIN_OF      # 72  (real im2col contraction, of)
KPAD = 128             # per-stream padded contraction width
KTOT = 2 * KPAD        # merged block-diagonal contraction width (256)
FJ = 2 * FEAT          # merged feature width (rgb lanes 0:16, of lanes 16:32)
NPAD = 128             # lane-dense padded head width

# f32 parameter-slab row offsets (all multiples of 8 -> aligned sublane slices)
ROW_BFOLD = 0                  # row 0: folded fc1 bias (lanes 0:NUM_FC)
ROW_B2 = 1                     # row 1: fc2 bias        (lanes 0:NB_CLASSES)
ROW_WFOLD = 8                  # rows 8:40   -> W_fold (2*FEAT, NUM_FC), lane-padded
ROW_W2 = 40                    # rows 40:168 -> W2     (NPAD, NPAD), row/lane-padded
PAR_ROWS = ROW_W2 + NPAD       # 168


# ---------------- fused Pallas kernel ----------------

def joint_kernel(patch_ref, wc_ref, pool_ref, par_ref, out_ref):
    """Fused JointModel forward: merged conv -> ReLU -> GAP -> folded fc1 -> fc2."""
    # 1) both backbone convs as ONE block-diagonal MXU matmul (bf16 operands,
    #    f32 accumulate); conv biases come in via the ones-columns of the slab.
    feat = jnp.maximum(
        jnp.dot(patch_ref[...], wc_ref[...], preferred_element_type=jnp.float32),
        0.0)                                                        # (M, 2*FEAT) f32

    # 2) both global-average-pools as ONE f32 MXU matmul against the pooling matrix.
    pooled = jnp.dot(pool_ref[...], feat,
                     preferred_element_type=jnp.float32)            # (B, 2*FEAT)

    # 3) backbone-logits matmuls folded into fc1 (valid because dropout is
    #    identity in eval mode), then ReLU.  Everything f32, 128 lanes wide.
    h = jnp.maximum(
        jnp.dot(pooled, par_ref[ROW_WFOLD:ROW_WFOLD + FJ, :],
                preferred_element_type=jnp.float32)
        + par_ref[ROW_BFOLD:ROW_BFOLD + 1, :],
        0.0)                                                        # (B, NPAD)

    # 4) fc2; output stays lane-dense at 128 (wrapper slices back to NB_CLASSES).
    out_ref[...] = (
        jnp.dot(h, par_ref[ROW_W2:ROW_W2 + NPAD, :],
                preferred_element_type=jnp.float32)
        + par_ref[ROW_B2:ROW_B2 + 1, :])


# ---------------- wrapper (glue, all under jit) ----------------

def im2col_3x3(x_nchw):
    """NCHW -> (B*H*W, 9*Cin) flat patches for a 3x3, stride-1, pad-1 conv."""
    x = jnp.transpose(x_nchw, (0, 2, 3, 1))              # NCHW -> NHWC
    b, h, w, c = x.shape
    xp = jnp.pad(x, ((0, 0), (1, 1), (1, 1), (0, 0)))
    cols = [xp[:, dy:dy + h, dx:dx + w, :] for dy in range(3) for dx in range(3)]
    return jnp.concatenate(cols, axis=-1).reshape(b * h * w, 9 * c)


def prepare_operands(x_rgb, x_of, params):
    """Pack everything into 4 kernel operands: patches, conv weight, pool, params."""
    wc_rgb, bc_rgb, wh_rgb, bh_rgb = params["rgb"]
    wc_of, bc_of, wh_of, bh_of = params["of"]
    w1, b1, w2, b2 = params["head"]

    # --- merged patch slab: rgb in cols 0:81, of in cols 128:200; the spare
    #     zero-padded cols 127/255 carry ones so the conv bias rides the MXU ---
    patches = jnp.zeros((M, KTOT), jnp.float32)
    patches = patches.at[:, :K_RGB].set(im2col_3x3(x_rgb))
    patches = patches.at[:, KPAD - 1].set(1.0)
    patches = patches.at[:, KPAD:KPAD + K_OF].set(im2col_3x3(x_of))
    patches = patches.at[:, KTOT - 1].set(1.0)
    patches = patches.astype(jnp.bfloat16)

    # --- block-diagonal conv weight (+ conv biases in the ones-rows) ---
    wc = jnp.zeros((KTOT, FJ), jnp.float32)
    wc = wc.at[:K_RGB, :FEAT].set(wc_rgb)
    wc = wc.at[KPAD - 1, :FEAT].set(bc_rgb[0])
    wc = wc.at[KPAD:KPAD + K_OF, FEAT:].set(wc_of)
    wc = wc.at[KTOT - 1, FEAT:].set(bc_of[0])
    wc = wc.astype(jnp.bfloat16)

    # --- (B, M) pooling matrix: row b averages its own H*W rows (f32, exact) ---
    pool = jnp.kron(jnp.eye(B, dtype=jnp.float32),
                    jnp.full((1, H * W), 1.0 / (H * W), jnp.float32))

    # --- eval-mode algebraic fold: backbone logits layer folded into fc1 ---
    w_fold = jnp.concatenate([wh_rgb @ w1[:NB_CLASSES],
                              wh_of @ w1[NB_CLASSES:]], axis=0)        # (2*FEAT, NUM_FC)
    b_fold = b1 + bh_rgb @ w1[:NB_CLASSES] + bh_of @ w1[NB_CLASSES:]   # (1, NUM_FC)

    # --- single f32 parameter slab (one DMA for all the small head params) ---
    par = jnp.zeros((PAR_ROWS, NPAD), jnp.float32)
    par = par.at[ROW_BFOLD, :NUM_FC].set(b_fold[0])
    par = par.at[ROW_B2, :NB_CLASSES].set(b2[0])
    par = par.at[ROW_WFOLD:ROW_WFOLD + FJ, :NUM_FC].set(w_fold)
    par = par.at[ROW_W2:ROW_W2 + NUM_FC, :NB_CLASSES].set(w2)

    return patches, wc, pool, par


@jax.jit
def joint_model_forward(x_rgb, x_of, params):
    """Full JointModel.forward: jit-fused prep + one fused pallas_call."""
    args = prepare_operands(x_rgb, x_of, params)

    # Unpadded FLOPs (honest scheduling hint); bytes from the actual operands.
    flops = (2 * M * K_RGB * FEAT + 2 * M * K_OF * FEAT  # two convs (real K)
             + 2 * B * M * FJ                            # global-average-pool matmul
             + 2 * B * FJ * NUM_FC                       # folded fc1
             + 2 * B * NUM_FC * NB_CLASSES)              # fc2
    bytes_accessed = (sum(int(a.size) * a.dtype.itemsize for a in args)
                      + B * NPAD * 4)

    out_padded = pl.pallas_call(
        joint_kernel,
        out_shape=jax.ShapeDtypeStruct((B, NPAD), jnp.float32),
        in_specs=[pl.BlockSpec(memory_space=pltpu.MemorySpace.VMEM)] * len(args),
        out_specs=pl.BlockSpec(memory_space=pltpu.MemorySpace.VMEM),
        cost_estimate=pl.CostEstimate(
            flops=flops, transcendentals=0, bytes_accessed=bytes_accessed),
    )(*args)
    return out_padded[:, :NB_CLASSES]


# ---------------- main ----------------

if __name__ == "__main__":
    key = jax.random.PRNGKey(0)
    keys = jax.random.split(key, 12)

    def init(k, shape, scale=0.05):
        return (scale * jax.random.normal(k, shape)).astype(jnp.float32)

    # inputs (PyTorch NCHW convention): rgb has rgb_seq*3 channels, of has of_seq*2
    x_rgb = jax.random.normal(keys[0], (B, CIN_RGB, H, W), dtype=jnp.float32)
    x_of = jax.random.normal(keys[1], (B, CIN_OF, H, W), dtype=jnp.float32)

    params = {
        "rgb": (
            init(keys[2], (K_RGB, FEAT)),            # conv weight (im2col form)
            init(keys[3], (1, FEAT)),                # conv bias
            init(keys[4], (FEAT, NB_CLASSES)),       # backbone logits weight
            init(keys[5], (1, NB_CLASSES)),          # backbone logits bias
        ),
        "of": (
            init(keys[6], (K_OF, FEAT)),
            init(keys[7], (1, FEAT)),
            init(keys[8], (FEAT, NB_CLASSES)),
            init(keys[9], (1, NB_CLASSES)),
        ),
        "head": (
            init(keys[10], (2 * NB_CLASSES, NUM_FC)),  # fc1.weight^T
            jnp.zeros((1, NUM_FC), jnp.float32),       # fc1.bias
            init(keys[11], (NUM_FC, NB_CLASSES)),      # fc2.weight^T
            jnp.zeros((1, NB_CLASSES), jnp.float32),   # fc2.bias
        ),
    }

    out = joint_model_forward(x_rgb, x_of, params)
    out = jax.block_until_ready(out)
    assert out.shape == (B, NB_CLASSES)

    # pure-JAX f32 reference (unfused, mirrors the PyTorch op order)
    def ref_backbone(x, wc, bc, wh, bh):
        p = im2col_3x3(x)                               # (B*H*W, 9*Cin)
        f = jnp.maximum(p @ wc + bc, 0.0)
        pooled = f.reshape(B, H * W, FEAT).mean(axis=1)
        return pooled @ wh + bh

    r_rgb = ref_backbone(x_rgb, *params["rgb"])
    r_of = ref_backbone(x_of, *params["of"])
    w1, b1, w2, b2 = params["head"]
    ref = jnp.maximum(jnp.concatenate([r_rgb, r_of], axis=1) @ w1 + b1, 0.0) @ w2 + b2
    # conv operands are bf16 (f32 accumulate); everything downstream is f32
    assert jnp.allclose(out, ref, rtol=2e-2, atol=2e-2), "mismatch vs reference"

    print("KERNEL_OK")
</pallas_src>

<mosaic_0001>
module attributes {stable_mosaic.version = 11 : i64} {
  func.func @joint_kernel(%arg0: memref<512x256xbf16, #tpu.memory_space<vmem>>, %arg1: memref<256x32xbf16, #tpu.memory_space<vmem>>, %arg2: memref<2x512xf32, #tpu.memory_space<vmem>>, %arg3: memref<168x128xf32, #tpu.memory_space<vmem>>, %arg4: memref<2x128xf32, #tpu.memory_space<vmem>>) attributes {dimension_semantics = [], scalar_prefetch = 0 : i64, scratch_operands = 0 : i64, tpu.core_type = #tpu.core_type<tc>} {
    %c0 = arith.constant 0 : index
    %c0_0 = arith.constant 0 : index
    %0 = vector.load %arg0[%c0, %c0_0] : memref<512x256xbf16, #tpu.memory_space<vmem>>, vector<512x256xbf16>
    %c0_1 = arith.constant 0 : index
    %c0_2 = arith.constant 0 : index
    %1 = vector.load %arg1[%c0_1, %c0_2] : memref<256x32xbf16, #tpu.memory_space<vmem>>, vector<256x32xbf16>
    %cst = arith.constant dense<0.000000e+00> : vector<512x32xf32>
    %2 = tpu.matmul %0, %1, %cst {dimension_numbers = #tpu.dot_dimension_numbers<[1], [0], [0], [1], [0, 0, 1, 1], [], []>} : vector<512x256xbf16>, vector<256x32xbf16>, vector<512x32xf32> -> vector<512x32xf32>
    %cst_3 = arith.constant 0.000000e+00 : f32
    %3 = vector.broadcast %cst_3 : f32 to vector<512x32xf32>
    %4 = arith.maximumf %2, %3 : vector<512x32xf32>
    %c0_4 = arith.constant 0 : index
    %c0_5 = arith.constant 0 : index
    %5 = vector.load %arg2[%c0_4, %c0_5] : memref<2x512xf32, #tpu.memory_space<vmem>>, vector<2x512xf32>
    %cst_6 = arith.constant dense<0.000000e+00> : vector<2x32xf32>
    %6 = tpu.matmul %5, %4, %cst_6 {dimension_numbers = #tpu.dot_dimension_numbers<[1], [0], [0], [1], [0, 0, 1, 1], [], []>} : vector<2x512xf32>, vector<512x32xf32>, vector<2x32xf32> -> vector<2x32xf32>
    %c8 = arith.constant 8 : index
    %c0_7 = arith.constant 0 : index
    %7 = vector.load %arg3[%c8, %c0_7] : memref<168x128xf32, #tpu.memory_space<vmem>>, vector<32x128xf32>
    %cst_8 = arith.constant dense<0.000000e+00> : vector<2x128xf32>
    %8 = tpu.matmul %6, %7, %cst_8 {dimension_numbers = #tpu.dot_dimension_numbers<[1], [0], [0], [1], [0, 0, 1, 1], [], []>} : vector<2x32xf32>, vector<32x128xf32>, vector<2x128xf32> -> vector<2x128xf32>
    %c0_9 = arith.constant 0 : index
    %c0_10 = arith.constant 0 : index
    %9 = vector.load %arg3[%c0_9, %c0_10] : memref<168x128xf32, #tpu.memory_space<vmem>>, vector<1x128xf32>
    %10 = vector.broadcast %9 : vector<1x128xf32> to vector<2x128xf32>
    %11 = arith.addf %8, %10 : vector<2x128xf32>
    %cst_11 = arith.constant 0.000000e+00 : f32
    %12 = vector.broadcast %cst_11 : f32 to vector<2x128xf32>
    %13 = arith.maximumf %11, %12 : vector<2x128xf32>
    %c40 = arith.constant 40 : index
    %c0_12 = arith.constant 0 : index
    %14 = vector.load %arg3[%c40, %c0_12] : memref<168x128xf32, #tpu.memory_space<vmem>>, vector<128x128xf32>
    %cst_13 = arith.constant dense<0.000000e+00> : vector<2x128xf32>
    %15 = tpu.matmul %13, %14, %cst_13 {dimension_numbers = #tpu.dot_dimension_numbers<[1], [0], [0], [1], [0, 0, 1, 1], [], []>} : vector<2x128xf32>, vector<128x128xf32>, vector<2x128xf32> -> vector<2x128xf32>
    %c1 = arith.constant 1 : index
    %c0_14 = arith.constant 0 : index
    %16 = vector.load %arg3[%c1, %c0_14] : memref<168x128xf32, #tpu.memory_space<vmem>>, vector<1x128xf32>
    %17 = vector.broadcast %16 : vector<1x128xf32> to vector<2x128xf32>
    %18 = arith.addf %15, %17 : vector<2x128xf32>
    %c0_15 = arith.constant 0 : index
    %c0_16 = arith.constant 0 : index
    %19 = vector.load %arg4[%c0_15, %c0_16] : memref<2x128xf32, #tpu.memory_space<vmem>>, vector<2x128xf32>
    tpu.vector_store %arg4[%c0_15, %c0_16], %18 {strides = array<i32>} : memref<2x128xf32, #tpu.memory_space<vmem>>, vector<2x128xf32>,
    return
  }
}

</mosaic_0001>

<bundles_post_ra>
// kernel: joint_model_forward.1
= control target key start
LH: loop header
LB: loop body
LE: loop exit
PB: predicated region body
PF: predicated region fallthrough
CT: control target
= control target key end

     0   :  { %v1630_v1 = vmov 0   ;;  %s2186_s0 = inlined_call_operand.vmem [shape: bf16[512,256], index: 0, kind: input, shape index: {}]   ;;  %s2187_s1 = inlined_call_operand.vmem [shape: bf16[256,32], index: 1, kind: input, shape index: {}]   ;;  %s2188_s2 = inlined_call_operand.vmem [shape: f32[2,512], index: 2, kind: input, shape index: {}]   ;;  %s2189_s3 = inlined_call_operand.vmem [shape: f32[168,128], index: 3, kind: input, shape index: {}]   ;;  %s2190_s4 = inlined_call_operand.hbm [shape: f32[2,128], index: 4, kind: output, shape index: {}]  }
   0x1   :  { %v1495_v0 = vld [vmem:[%s2187_s1 + $0x38] sm:$0xff]   ;;  %531 = vmatprep.subr.bf16.mxu0 %v1630_v1  ;;  %1458 = vmatprep.subr.bf16.mxu1 %v1630_v1  ;;  %v1496_v2 = vld [vmem:[%s2187_s1 + $0x30] sm:$0xff]   ;;  %v1497_v3 = vld [vmem:[%s2187_s1 + $0x28] sm:$0xff]  }
   0x2   :  { %532 = vmatpush1.bf16.msra.mxu0 %v1495_v0  ;;  %1474 = vmatpush1.bf16.msra.mxu1 %v1495_v0  ;;  %v1498_v4 = vld [vmem:[%s2187_s1 + $0x20] sm:$0xff]   ;;  %v1499_v5 = vld [vmem:[%s2187_s1 + $0x18] sm:$0xff]   ;;  %v1500_v7 = vld [vmem:[%s2187_s1 + $0x10] sm:$0xff]  }
   0x3   :  { %533 = vmatprep.subr.bf16.mxu0 %v1630_v1  ;;  %1459 = vmatprep.subr.bf16.mxu1 %v1630_v1  ;;  %v1513_v6 = vld [vmem:[%s2186_s0 + $0x4] ss:$8 sps:$4 sm:$0xff]   ;;  %v1503_v10 = vld [vmem:[%s2187_s1 + $0x78] sm:$0xff]   ;;  %v1504_v12 = vld [vmem:[%s2187_s1 + $0x70] sm:$0xff]  }
   0x4   :  { %563 = vmatprep.mubr.bf16.mxu0 %v1513_v6  ;;  %v1501_v8 = vld [vmem:[%s2187_s1 + $0x8] sm:$0xff]   ;;  %v1502_v9 = vld [vmem:[%s2187_s1] sm:$0xff]   ;;  %v1542_v11 = vld [vmem:[%s2186_s0 + $0x154] ss:$8 sps:$4 sm:$0xff]  }
   0x5   :  { %731 = vmatprep.mubr.bf16.mxu1 %v1542_v11  ;;  %v1505_v13 = vld [vmem:[%s2187_s1 + $0x68] sm:$0xff]   ;;  %v1506_v14 = vld [vmem:[%s2187_s1 + $0x60] sm:$0xff]   ;;  %v1507_v15 = vld [vmem:[%s2187_s1 + $0x58] sm:$0xff]  }
   0x6   :  { %534 = vmatpush1.bf16.msra.mxu0 %v1496_v2  ;;  %1475 = vmatpush1.bf16.msra.mxu1 %v1496_v2  ;;  %v1508_v16 = vld [vmem:[%s2187_s1 + $0x50] sm:$0xff]  }
   0x7   :  { %535 = vmatprep.subr.bf16.mxu0 %v1630_v1  ;;  %1460 = vmatprep.subr.bf16.mxu1 %v1630_v1 }
   0xa   :  { %536 = vmatpush1.bf16.msra.mxu0 %v1497_v3  ;;  %1476 = vmatpush1.bf16.msra.mxu1 %v1497_v3 }
   0xb   :  { %537 = vmatprep.subr.bf16.mxu0 %v1630_v1  ;;  %1461 = vmatprep.subr.bf16.mxu1 %v1630_v1 }
   0xe   :  { %538 = vmatpush1.bf16.msra.mxu0 %v1498_v4  ;;  %1477 = vmatpush1.bf16.msra.mxu1 %v1498_v4 }
   0xf   :  { %539 = vmatprep.subr.bf16.mxu0 %v1630_v1  ;;  %1462 = vmatprep.subr.bf16.mxu1 %v1630_v1 }
  0x12   :  { %540 = vmatpush1.bf16.msra.mxu0 %v1499_v5  ;;  %1478 = vmatpush1.bf16.msra.mxu1 %v1499_v5 }
  0x13   :  { %541 = vmatprep.subr.bf16.mxu0 %v1630_v1  ;;  %1463 = vmatprep.subr.bf16.mxu1 %v1630_v1 }
  0x16   :  { %542 = vmatpush1.bf16.msra.mxu0 %v1500_v7  ;;  %1479 = vmatpush1.bf16.msra.mxu1 %v1500_v7 }
  0x17   :  { %543 = vmatprep.subr.bf16.mxu0 %v1630_v1  ;;  %1464 = vmatprep.subr.bf16.mxu1 %v1630_v1 }
  0x1a   :  { %544 = vmatpush1.bf16.msra.mxu0 %v1501_v8  ;;  %1480 = vmatpush1.bf16.msra.mxu1 %v1501_v8 }
  0x1b   :  { %545 = vmatprep.subr.bf16.mxu0 %v1630_v1  ;;  %1465 = vmatprep.subr.bf16.mxu1 %v1630_v1 }
  0x1e   :  { %546 = vmatpush1.bf16.msra.mxu0 %v1502_v9  ;;  %1481 = vmatpush1.bf16.msra.mxu1 %v1502_v9 }
  0x1f   :  { %547 = vmatprep.subr.bf16.mxu0 %v1630_v1  ;;  %1466 = vmatprep.subr.bf16.mxu1 %v1630_v1 }
  0x22   :  { %548 = vmatpush2.bf16.msra.mxu0 %v1503_v10  ;;  %1482 = vmatpush2.bf16.msra.mxu1 %v1503_v10 }
  0x23   :  { %549 = vmatprep.subr.bf16.mxu0 %v1630_v1  ;;  %1467 = vmatprep.subr.bf16.mxu1 %v1630_v1 }
  0x26   :  { %550 = vmatpush2.bf16.msra.mxu0 %v1504_v12  ;;  %1483 = vmatpush2.bf16.msra.mxu1 %v1504_v12 }
  0x27   :  { %551 = vmatprep.subr.bf16.mxu0 %v1630_v1  ;;  %1468 = vmatprep.subr.bf16.mxu1 %v1630_v1 }
  0x2a   :  { %552 = vmatpush2.bf16.msra.mxu0 %v1505_v13  ;;  %1484 = vmatpush2.bf16.msra.mxu1 %v1505_v13 }
  0x2b   :  { %553 = vmatprep.subr.bf16.mxu0 %v1630_v1  ;;  %1469 = vmatprep.subr.bf16.mxu1 %v1630_v1 }
  0x2e   :  { %554 = vmatpush2.bf16.msra.mxu0 %v1506_v14  ;;  %1485 = vmatpush2.bf16.msra.mxu1 %v1506_v14 }
  0x2f   :  { %555 = vmatprep.subr.bf16.mxu0 %v1630_v1  ;;  %1470 = vmatprep.subr.bf16.mxu1 %v1630_v1 }
  0x32   :  { %556 = vmatpush2.bf16.msra.mxu0 %v1507_v15  ;;  %1486 = vmatpush2.bf16.msra.mxu1 %v1507_v15 }
  0x33   :  { %557 = vmatprep.subr.bf16.mxu0 %v1630_v1  ;;  %1471 = vmatprep.subr.bf16.mxu1 %v1630_v1 }
  0x34   :  { %9 = vsyncpa [#allocation3], 0  ;;  %v1509_v17 = vld [vmem:[%s2187_s1 + $0x48] sm:$0xff]   ;;  %v1510_v18 = vld [vmem:[%s2187_s1 + $0x40] sm:$0xff]   ;;  %vm1633_vm0 = vmmov 0   ;;  %vm1056_vm1 = vcmask 261120  }
  0x35   :  { %v1511_v19 = vld [vmem:[%s2186_s0] ss:$8 sps:$4 sm:$0xff]   ;;  %v1540_v20 = vld [vmem:[%s2186_s0 + $0x150] ss:$8 sps:$4 sm:$0xff]   ;;  %v1514_v21 = vld [vmem:[%s2186_s0 + $0x14] ss:$8 sps:$4 sm:$0xff]  }
  0x36   :  { %558 = vmatpush2.bf16.msra.mxu0 %v1508_v16  ;;  %1487 = vmatpush2.bf16.msra.mxu1 %v1508_v16  ;;  %v1546_v22 = vld [vmem:[%s2186_s0 + $0x164] ss:$8 sps:$4 sm:$0xff]   ;;  %v1516_v23 = vld [vmem:[%s2186_s0 + $0x10] ss:$8 sps:$4 sm:$0xff]   ;;  %v1549_v24 = vld [vmem:[%s2186_s0 + $0x160] ss:$8 sps:$4 sm:$0xff]  }
  0x37   :  { %559 = vmatprep.subr.bf16.mxu0 %v1630_v1  ;;  %1472 = vmatprep.subr.bf16.mxu1 %v1630_v1  ;;  %v1517_v25 = vld [vmem:[%s2186_s0 + $0x24] ss:$8 sps:$4 sm:$0xff]   ;;  %v1552_v26 = vld [vmem:[%s2186_s0 + $0x174] ss:$8 sps:$4 sm:$0xff]   ;;  %v1519_v27 = vld [vmem:[%s2186_s0 + $0x20] ss:$8 sps:$4 sm:$0xff]  }
  0x38   :  { %v1555_v28 = vld [vmem:[%s2186_s0 + $0x170] ss:$8 sps:$4 sm:$0xff]   ;;  %v1520_v29 = vld [vmem:[%s2186_s0 + $0x34] ss:$8 sps:$4 sm:$0xff]   ;;  %v1558_v30 = vld [vmem:[%s2186_s0 + $0x184] ss:$8 sps:$4 sm:$0xff]  }
  0x39   :  { %v1522_v31 = vld [vmem:[%s2186_s0 + $0x30] ss:$8 sps:$4 sm:$0xff]   ;;  %v1561_v32 = vld [vmem:[%s2186_s0 + $0x180] ss:$8 sps:$4 sm:$0xff]   ;;  %v1523_v33 = vld [vmem:[%s2186_s0 + $0x44] ss:$8 sps:$4 sm:$0xff]  }
  0x3a   :  { %560 = vmatpush2.bf16.msra.mxu0 %v1509_v17  ;;  %1488 = vmatpush2.bf16.msra.mxu1 %v1509_v17  ;;  %v1564_v34 = vld [vmem:[%s2186_s0 + $0x194] ss:$8 sps:$4 sm:$0xff]   ;;  %v1525_v35 = vld [vmem:[%s2186_s0 + $0x40] ss:$8 sps:$4 sm:$0xff]   ;;  %v1567_v36 = vld [vmem:[%s2186_s0 + $0x190] ss:$8 sps:$4 sm:$0xff]  }
  0x3b   :  { %561 = vmatprep.subr.bf16.mxu0 %v1630_v1  ;;  %1473 = vmatprep.subr.bf16.mxu1 %v1630_v1  ;;  %v1526_v37 = vld [vmem:[%s2186_s0 + $0x54] ss:$8 sps:$4 sm:$0xff]   ;;  %v1570_v38 = vld [vmem:[%s2186_s0 + $0x1a4] ss:$8 sps:$4 sm:$0xff]   ;;  %v1528_v39 = vld [vmem:[%s2186_s0 + $0x50] ss:$8 sps:$4 sm:$0xff]  }
  0x3c   :  { %v1573_v40 = vld [vmem:[%s2186_s0 + $0x1a0] ss:$8 sps:$4 sm:$0xff]   ;;  %v1529_v41 = vld [vmem:[%s2186_s0 + $0x64] ss:$8 sps:$4 sm:$0xff]   ;;  %v1576_v42 = vld [vmem:[%s2186_s0 + $0x1b4] ss:$8 sps:$4 sm:$0xff]  }
  0x3d   :  { %v1531_v43 = vld [vmem:[%s2186_s0 + $0x60] ss:$8 sps:$4 sm:$0xff]   ;;  %v1579_v44 = vld [vmem:[%s2186_s0 + $0x1b0] ss:$8 sps:$4 sm:$0xff]   ;;  %v1532_v45 = vld [vmem:[%s2186_s0 + $0x74] ss:$8 sps:$4 sm:$0xff]  }
  0x3e   :  { %562 = vmatpush2.bf16.msra.mxu0 %v1510_v18  ;;  %1489 = vmatpush2.bf16.msra.mxu1 %v1510_v18  ;;  %v1580_v46 = vld [vmem:[%s2186_s0 + $0x1c4] ss:$8 sps:$4 sm:$0xff]   ;;  %v1534_v47 = vld [vmem:[%s2186_s0 + $0x70] ss:$8 sps:$4 sm:$0xff]   ;;  %v1582_v48 = vld [vmem:[%s2186_s0 + $0x1c0] ss:$8 sps:$4 sm:$0xff]  }
  0x3f   :  { %v1535_v49 = vld [vmem:[%s2186_s0 + $0x84] ss:$8 sps:$4 sm:$0xff]   ;;  %v1586_v50 = vld [vmem:[%s2186_s0 + $0x1d4] ss:$8 sps:$4 sm:$0xff]   ;;  %v1537_v51 = vld [vmem:[%s2186_s0 + $0x80] ss:$8 sps:$4 sm:$0xff]  }
  0x40   :  { %v1588_v52 = vld [vmem:[%s2186_s0 + $0x1d0] ss:$8 sps:$4 sm:$0xff]   ;;  %v1538_v53 = vld [vmem:[%s2186_s0 + $0x94] ss:$8 sps:$4 sm:$0xff]   ;;  %v1592_v54 = vld [vmem:[%s2186_s0 + $0x1e4] ss:$8 sps:$4 sm:$0xff]  }
  0x41   :  { %564 = vmatmul.mubr.bf16.vlgmr.msra.gmra.mxu0 %v1511_v19  ;;  %732 = vmatmul.mubr.bf16.vlgmr.msra.gmra.mxu1 %v1540_v20  ;;  %v1543_v55 = vld [vmem:[%s2186_s0 + $0x90] ss:$8 sps:$4 sm:$0xff]   ;;  %v1594_v56 = vld [vmem:[%s2186_s0 + $0x1e0] ss:$8 sps:$4 sm:$0xff]   ;;  %v1544_v57 = vld [vmem:[%s2186_s0 + $0xa4] ss:$8 sps:$4 sm:$0xff]  }
  0x42   :  { %571 = vmatprep.mubr.bf16.mxu0 %v1514_v21  ;;  %739 = vmatprep.mubr.bf16.mxu1 %v1546_v22  ;;  %v1598_v58 = vld [vmem:[%s2186_s0 + $0x1f4] ss:$8 sps:$4 sm:$0xff]   ;;  %v1548_v59 = vld [vmem:[%s2186_s0 + $0xa0] ss:$8 sps:$4 sm:$0xff]   ;;  %v1600_v60 = vld [vmem:[%s2186_s0 + $0x1f0] ss:$8 sps:$4 sm:$0xff]  }
  0x43   :  { %v1550_v61 = vld [vmem:[%s2186_s0 + $0xb4] ss:$8 sps:$4 sm:$0xff]   ;;  %v1554_v62 = vld [vmem:[%s2186_s0 + $0xb0] ss:$8 sps:$4 sm:$0xff]   ;;  %v1556_v63 = vld [vmem:[%s2186_s0 + $0xc4] ss:$8 sps:$4 sm:$0xff]  }
  0x44   :  { %v1560_v0 = vld [vmem:[%s2186_s0 + $0xc0] ss:$8 sps:$4 sm:$0xff]   ;;  %v1562_v1 = vld [vmem:[%s2186_s0 + $0xd4] ss:$8 sps:$4 sm:$0xff]   ;;  %v1566_v2 = vld [vmem:[%s2186_s0 + $0xd0] ss:$8 sps:$4 sm:$0xff]  }
  0x45   :  { %v1568_v3 = vld [vmem:[%s2186_s0 + $0xe4] ss:$8 sps:$4 sm:$0xff]   ;;  %v1572_v4 = vld [vmem:[%s2186_s0 + $0xe0] ss:$8 sps:$4 sm:$0xff]   ;;  %v1574_v5 = vld [vmem:[%s2186_s0 + $0xf4] ss:$8 sps:$4 sm:$0xff]  }
  0x46   :  { %v1578_v6 = vld [vmem:[%s2186_s0 + $0xf0] ss:$8 sps:$4 sm:$0xff]   ;;  %v1583_v7 = vld [vmem:[%s2186_s0 + $0x104] ss:$8 sps:$4 sm:$0xff]   ;;  %v1585_v8 = vld [vmem:[%s2186_s0 + $0x100] ss:$8 sps:$4 sm:$0xff]  }
  0x47   :  { %v1589_v9 = vld [vmem:[%s2186_s0 + $0x114] ss:$8 sps:$4 sm:$0xff]   ;;  %v1591_v10 = vld [vmem:[%s2186_s0 + $0x110] ss:$8 sps:$4 sm:$0xff]   ;;  %v1595_v11 = vld [vmem:[%s2186_s0 + $0x124] ss:$8 sps:$4 sm:$0xff]  }
  0x48   :  { %v1597_v12 = vld [vmem:[%s2186_s0 + $0x120] ss:$8 sps:$4 sm:$0xff]   ;;  %v1601_v13 = vld [vmem:[%s2186_s0 + $0x134] ss:$8 sps:$4 sm:$0xff]   ;;  %v1603_v14 = vld [vmem:[%s2186_s0 + $0x130] ss:$8 sps:$4 sm:$0xff]  }
  0x49   :  { %572 = vmatmul.mubr.bf16.gmra.mxu0 %v1516_v23  ;;  %740 = vmatmul.mubr.bf16.gmra.mxu1 %v1549_v24  ;;  %v1604_v15 = vld [vmem:[%s2186_s0 + $0x144] ss:$8 sps:$4 sm:$0xff]   ;;  %v1606_v16 = vld [vmem:[%s2186_s0 + $0x140] ss:$8 sps:$4 sm:$0xff]   ;;  %s1634_s29 = smov [#allocation2]  }
  0x4a   :  { %579 = vmatprep.mubr.bf16.mxu0 %v1517_v25  ;;  %747 = vmatprep.mubr.bf16.mxu1 %v1552_v26  ;;  %s1229_s30 = sshll.u32 %s1634_s29, 4  ;;  %s1230_s30 = int_to_ptr.vmem [resolvable:$true] %s1229_s30 }
  0x4b   :  { %s1608_s1 = scalar_lea.vmem %s1230_s30, 32  ;;  %p1613_p1 = scmp.lt.s32.totalorder %s1230_s30, %s1230_s30 }
  0x4c   :  { %p1609_p0 = scmp.ne.s32.totalorder %s1230_s30, %s1608_s1  ;;  %p1614_p2 = scmp.lt.s32.totalorder %s1608_s1, %s1608_s1 }
  0x4e   :  { %p1615_p3 = por %p1614_p2, %p1613_p1 }
  0x50   :  { %p1616_p4 = pnand %p1615_p3, %p1609_p0 }
  0x51   :  { %580 = vmatmul.mubr.bf16.gmra.mxu0 %v1519_v27  ;;  %748 = vmatmul.mubr.bf16.gmra.mxu1 %v1555_v28 }
  0x52   :  { %587 = vmatprep.mubr.bf16.mxu0 %v1520_v29  ;;  %755 = vmatprep.mubr.bf16.mxu1 %v1558_v30 }
  0x59   :  { %588 = vmatmul.mubr.bf16.gmra.mxu0 %v1522_v31  ;;  %756 = vmatmul.mubr.bf16.gmra.mxu1 %v1561_v32 }
  0x5a   :  { %595 = vmatprep.mubr.bf16.mxu0 %v1523_v33  ;;  %763 = vmatprep.mubr.bf16.mxu1 %v1564_v34 }
  0x61   :  { %596 = vmatmul.mubr.bf16.gmra.mxu0 %v1525_v35  ;;  %764 = vmatmul.mubr.bf16.gmra.mxu1 %v1567_v36 }
  0x62   :  { %603 = vmatprep.mubr.bf16.mxu0 %v1526_v37  ;;  %771 = vmatprep.mubr.bf16.mxu1 %v1570_v38 }
  0x69   :  { %604 = vmatmul.mubr.bf16.gmra.mxu0 %v1528_v39  ;;  %772 = vmatmul.mubr.bf16.gmra.mxu1 %v1573_v40  ;;  %v1631_v39 = vmov 1983009808  }
  0x6a   :  { %611 = vmatprep.mubr.bf16.mxu0 %v1529_v41  ;;  %779 = vmatprep.mubr.bf16.mxu1 %v1576_v42  ;;  %v888_v40 = vunpack.c.l.s4 %v1631_v39  ;;  %v890_v41 = vlaneseq }
  0x71   :  { %612 = vmatmul.mubr.bf16.gmra.mxu0 %v1531_v43  ;;  %780 = vmatmul.mubr.bf16.gmra.mxu1 %v1579_v44  ;;  %v889_v44 = vunpack.c.0.s8 %v888_v40 }
  0x72   :  { %619 = vmatprep.mubr.bf16.mxu0 %v1532_v45  ;;  %787 = vmatprep.mubr.bf16.mxu1 %v1580_v46  ;;  %v891_v45 = vshrl.u32 %v890_v41, 7 }
  0x79   :  { %620 = vmatmul.mubr.bf16.gmra.mxu0 %v1534_v47  ;;  %788 = vmatmul.mubr.bf16.gmra.mxu1 %v1582_v48  ;;  %v892_v48 = vsub.s32 %v889_v44, %v891_v45 }
  0x7a   :  { %627 = vmatprep.mubr.bf16.mxu0 %v1535_v49  ;;  %795 = vmatprep.mubr.bf16.mxu1 %v1586_v50  ;;  %v884_v49 = vld [vmem:[%s2188_s2] sm:$0xff] }
  0x81   :  { %628 = vmatmul.mubr.bf16.gmra.mxu0 %v1537_v51  ;;  %796 = vmatmul.mubr.bf16.gmra.mxu1 %v1588_v52  ;;  %v1963_v52 = vrot.slane %v884_v49, %v892_v48 }
  0x82   :  { %635 = vmatprep.mubr.bf16.mxu0 %v1538_v53  ;;  %803 = vmatprep.mubr.bf16.mxu1 %v1592_v54 }
  0x89   :  { %636 = vmatmul.mubr.bf16.gmra.mxu0 %v1543_v55  ;;  %804 = vmatmul.mubr.bf16.gmra.mxu1 %v1594_v56  ;;  %v901_v55 = vcombine.high %v1963_v52, %v1963_v52 }
  0x8a   :  { %643 = vmatprep.mubr.bf16.mxu0 %v1544_v57  ;;  %811 = vmatprep.mubr.bf16.mxu1 %v1598_v58 }
  0x91   :  { %644 = vmatmul.mubr.bf16.gmra.mxu0 %v1548_v59  ;;  %812 = vmatmul.mubr.bf16.gmra.mxu1 %v1600_v60 }
  0x92   :  { %651 = vmatprep.mubr.bf16.mxu0 %v1550_v61  ;;  %971 = vmatprep.mubr.f32.mxu1 %v901_v55 }
  0x99   :  { %652 = vmatmul.mubr.bf16.gmra.mxu0 %v1554_v62 }
  0x9a   :  { %659 = vmatprep.mubr.bf16.mxu0 %v1556_v63 }
  0xa1   :  { %660 = vmatmul.mubr.bf16.gmra.mxu0 %v1560_v0 }
  0xa2   :  { %667 = vmatprep.mubr.bf16.mxu0 %v1562_v1 }
  0xa9   :  { %668 = vmatmul.mubr.bf16.gmra.mxu0 %v1566_v2 }
  0xaa   :  { %675 = vmatprep.mubr.bf16.mxu0 %v1568_v3 }
  0xb1   :  { %676 = vmatmul.mubr.bf16.gmra.mxu0 %v1572_v4 }
  0xb2   :  { %683 = vmatprep.mubr.bf16.mxu0 %v1574_v5 }
  0xb9   :  { %684 = vmatmul.mubr.bf16.gmra.mxu0 %v1578_v6 }
  0xba   :  { %691 = vmatprep.mubr.bf16.mxu0 %v1583_v7 }
  0xc1   :  { %692 = vmatmul.mubr.bf16.gmra.mxu0 %v1585_v8 }
  0xc2   :  { %699 = vmatprep.mubr.bf16.mxu0 %v1589_v9 }
  0xc9   :  { %700 = vmatmul.mubr.bf16.gmra.mxu0 %v1591_v10 }
  0xca   :  { %707 = vmatprep.mubr.bf16.mxu0 %v1595_v11 }
  0xd1   :  { %708 = vmatmul.mubr.bf16.gmra.mxu0 %v1597_v12 }
  0xd2   :  { %715 = vmatprep.mubr.bf16.mxu0 %v1601_v13 }
  0xd9   :  { %716 = vmatmul.mubr.bf16.gmra.mxu0 %v1603_v14 }
  0xda   :  { %723 = vmatprep.mubr.bf16.mxu0 %v1604_v15 }
  0xe1   :  { %724 = vmatmul.mubr.bf16.gmra.mxu0 %v1606_v16 }
 0x101   :  { %v1932_v17 = vpop.f32.mrf.mxu0  ;;  %v1934_v18 = vpop.f32.mrf.mxu1 }
 0x103   :  { %v567_v19 = vpop.f32.mrf.mxu0  ;;  %v735_v20 = vpop.f32.mrf.mxu1 }
 0x105   :  { %v1936_v21 = vpop.f32.mrf.mxu0  ;;  %v1938_v22 = vpop.f32.mrf.mxu1 }
 0x107   :  { %v570_v23 = vpop.f32.mrf.mxu0  ;;  %v738_v24 = vpop.f32.mrf.mxu1 }
 0x108   :  { %v886_v24 = vcombine.high %v884_v49, %v884_v49 }
 0x109   :  { %v1940_v25 = vpop.f32.mrf.mxu0  ;;  %v1942_v26 = vpop.f32.mrf.mxu1 }
 0x10b   :  { %v575_v27 = vpop.f32.mrf.mxu0  ;;  %v743_v28 = vpop.f32.mrf.mxu1 }
 0x10d   :  { %v1944_v29 = vpop.f32.mrf.mxu0  ;;  %v1946_v30 = vpop.f32.mrf.mxu1 }
 0x10f   :  { %v578_v31 = vpop.f32.mrf.mxu0  ;;  %v746_v32 = vpop.f32.mrf.mxu1 }
 0x110   :  { %v1999_v31 = vrot.slane %v886_v24, %v892_v48 }
 0x111   :  { %v1948_v33 = vpop.f32.mrf.mxu0  ;;  %v1950_v34 = vpop.f32.mrf.mxu1 }
 0x113   :  { %v583_v35 = vpop.f32.mrf.mxu0  ;;  %v751_v36 = vpop.f32.mrf.mxu1 }
 0x115   :  { %v1952_v37 = vpop.f32.mrf.mxu0  ;;  %v1954_v38 = vpop.f32.mrf.mxu1 }
 0x117   :  { %v586_v42 = vpop.f32.mrf.mxu0  ;;  %v754_v43 = vpop.f32.mrf.mxu1 }
 0x119   :  { %v1956_v46 = vpop.f32.mrf.mxu0  ;;  %v1958_v47 = vpop.f32.mrf.mxu1 }
 0x11a   :  { %2191 = vst [vmem:[#allocation5_spill] sm:$0xff] %v1958_v47 }
 0x11b   :  { %v591_v50 = vpop.f32.mrf.mxu0  ;;  %v759_v51 = vpop.f32.mrf.mxu1 }
 0x11d   :  { %v1965_v53 = vpop.f32.mrf.mxu0  ;;  %v1967_v54 = vpop.f32.mrf.mxu1 }
 0x11e   :  { %2192 = vst [vmem:[#allocation6_spill] sm:$0xff] %v1967_v54 }
 0x11f   :  { %v594_v56 = vpop.f32.mrf.mxu0  ;;  %v762_v57 = vpop.f32.mrf.mxu1 }
 0x121   :  { %v1971_v58 = vpop.f32.mrf.mxu0  ;;  %v1973_v59 = vpop.f32.mrf.mxu1 }
 0x122   :  { %2193 = vst [vmem:[#allocation7_spill] sm:$0xff] %v1973_v59 }
 0x123   :  { %v599_v60 = vpop.f32.mrf.mxu0  ;;  %v767_v61 = vpop.f32.mrf.mxu1 }
 0x125   :  { %v1975_v62 = vpop.f32.mrf.mxu0  ;;  %v1977_v63 = vpop.f32.mrf.mxu1 }
 0x126   :  { %2194 = vst [vmem:[#allocation8_spill] sm:$0xff] %v1977_v63 }
 0x127   :  { %v602_v0 = vpop.f32.mrf.mxu0  ;;  %v770_v1 = vpop.f32.mrf.mxu1 }
 0x129   :  { %v1979_v2 = vpop.f32.mrf.mxu0  ;;  %v1981_v3 = vpop.f32.mrf.mxu1 }
 0x12b   :  { %v607_v4 = vpop.f32.mrf.mxu0  ;;  %v775_v5 = vpop.f32.mrf.mxu1 }
 0x12d   :  { %v1983_v6 = vpop.f32.mrf.mxu0  ;;  %v1985_v7 = vpop.f32.mrf.mxu1 }
 0x12f   :  { %v610_v8 = vpop.f32.mrf.mxu0  ;;  %v778_v9 = vpop.f32.mrf.mxu1 }
 0x131   :  { %v1987_v10 = vpop.f32.mrf.mxu0  ;;  %v1989_v11 = vpop.f32.mrf.mxu1 }
 0x133   :  { %v615_v12 = vpop.f32.mrf.mxu0  ;;  %v783_v13 = vpop.f32.mrf.mxu1 }
 0x135   :  { %v1991_v14 = vpop.f32.mrf.mxu0  ;;  %v1993_v15 = vpop.f32.mrf.mxu1 }
 0x137   :  { %v618_v16 = vpop.f32.mrf.mxu0  ;;  %v786_v19 = vpop.f32.mrf.mxu1 }
 0x139   :  { %v1995_v20 = vpop.f32.mrf.mxu0  ;;  %v1997_v23 = vpop.f32.mrf.mxu1 }
 0x13b   :  { %v623_v27 = vpop.f32.mrf.mxu0  ;;  %v791_v28 = vpop.f32.mrf.mxu1 }
 0x13d   :  { %v624_v32 = vpop.f32.mrf.mxu0  ;;  %v2001_v35 = vpop.f32.mrf.mxu1 }
 0x13e   :  { %v835_v59 = vmax.f32 %v624_v32, 0.0 }
 0x13f   :  { %v626_v36 = vpop.f32.mrf.mxu0  ;;  %v794_v39 = vpop.f32.mrf.mxu1 }
 0x141   :  { %v2003_v40 = vpop.f32.mrf.mxu0  ;;  %v2005_v41 = vpop.f32.mrf.mxu1 }
 0x143   :  { %v631_v42 = vpop.f32.mrf.mxu0  ;;  %v799_v43 = vpop.f32.mrf.mxu1 }
 0x145   :  { %v2007_v44 = vpop.f32.mrf.mxu0  ;;  %v2009_v45 = vpop.f32.mrf.mxu1 }
 0x147   :  { %v634_v49 = vpop.f32.mrf.mxu0  ;;  %v802_v50 = vpop.f32.mrf.mxu1 }
 0x149   :  { %v2011_v51 = vpop.f32.mrf.mxu0  ;;  %v2013_v48 = vpop.f32.mrf.mxu1 }
 0x14b   :  { %v639_v55 = vpop.f32.mrf.mxu0  ;;  %v807_v56 = vpop.f32.mrf.mxu1 }
 0x14d   :  { %v2015_v57 = vpop.f32.mrf.mxu0  ;;  %v2017_v60 = vpop.f32.mrf.mxu1 }
 0x14f   :  { %v642_v61 = vpop.f32.mrf.mxu0  ;;  %v810_v0 = vpop.f32.mrf.mxu1 }
 0x151   :  { %v2019_v1 = vpop.f32.mrf.mxu0  ;;  %v2021_v4 = vpop.f32.mrf.mxu1 }
 0x153   :  { %v647_v5 = vpop.f32.mrf.mxu0  ;;  %v815_v8 = vpop.f32.mrf.mxu1 }
 0x155   :  { %v2023_v9 = vpop.f32.mrf.mxu0  ;;  %v2025_v12 = vpop.f32.mrf.mxu1 }
 0x157   :  { %v650_v13 = vpop.f32.mrf.mxu0  ;;  %v818_v16 = vpop.f32.mrf.mxu1 }
 0x159   :  { %v2027_v19 = vpop.f32.mrf.mxu0 }
 0x15b   :  { %v655_v24 = vpop.f32.mrf.mxu0 }
 0x15d   :  { %v656_v27 = vpop.f32.mrf.mxu0 }
 0x15f   :  { %v658_v28 = vpop.f32.mrf.mxu0 }
 0x160   :  { %v834_v28 = vmax.f32 %v1995_v20, 0.0 }
 0x161   :  { %v661_v36 = vpop.f32.mrf.mxu0 }
 0x163   :  { %v663_v39 = vpop.f32.mrf.mxu0 }
 0x165   :  { %v664_v42 = vpop.f32.mrf.mxu0 }
 0x167   :  { %v666_v43 = vpop.f32.mrf.mxu0 }
 0x169   :  { %v669_v49 = vpop.f32.mrf.mxu0 }
 0x16a   :  { %v846_v20 = vmax.f32 %v669_v49, 0.0  ;;  %v843_v49 = vmax.f32 %v656_v27, 0.0 }
 0x16b   :  { %v671_v50 = vpop.f32.mrf.mxu0 }
 0x16c   :  { %v833_v50 = vmax.f32 %v1991_v14, 0.0 }
 0x16d   :  { %v672_v55 = vpop.f32.mrf.mxu0 }
 0x16f   :  { %v674_v56 = vpop.f32.mrf.mxu0 }
 0x171   :  { %v677_v61 = vpop.f32.mrf.mxu0 }
 0x173   :  { %v679_v0 = vpop.f32.mrf.mxu0 }
 0x174   :  { %v848_v0 = vmax.f32 %v677_v61, 0.0  ;;  %v845_v61 = vmax.f32 %v664_v42, 0.0  ;;  %v842_v42 = vmax.f32 %v2027_v19, 0.0 }
 0x175   :  { %v680_v5 = vpop.f32.mrf.mxu0 }
 0x176   :  { %v849_v43 = vmax.f32 %v680_v5, 0.0 }
 0x177   :  { %v682_v8 = vpop.f32.mrf.mxu0 }
 0x178   :  { %v832_v8 = vmax.f32 %v1987_v10, 0.0  ;;  %v829_v10 = vmax.f32 %v1975_v62, 0.0  ;;  %v826_v62 = vmax.f32 %v1956_v46, 0.0  ;;  %v839_v46 = vmax.f32 %v2015_v57, 0.0 }
 0x179   :  { %v685_v47 = vpop.f32.mrf.mxu0  ;;  %v836_v57 = vmax.f32 %v2003_v40, 0.0  ;;  %v866_v40 = vmax.f32 %v1950_v34, 0.0  ;;  %v863_v34 = vmax.f32 %v1938_v22, 0.0  ;;  %v875_v22 = vmax.f32 %v1993_v15, 0.0  ;;  %v2195_v15 = vld [vmem:[#allocation8_spill] sm:$0xff] }
 0x17a   :  { %v850_v63 = vmax.f32 %v685_v47, 0.0  ;;  %v847_v47 = vmax.f32 %v672_v55, 0.0  ;;  %v828_v55 = vmax.f32 %v1971_v58, 0.0  ;;  %v825_v58 = vmax.f32 %v1952_v37, 0.0 }
 0x17b   :  { %v687_v13 = vpop.f32.mrf.mxu0  ;;  %v822_v37 = vmax.f32 %v1940_v25, 0.0  ;;  %v883_v25 = vmax.f32 %v2025_v12, 0.0  ;;  %v865_v12 = vmax.f32 %v1946_v30, 0.0  ;;  %v862_v30 = vmax.f32 %v1934_v18, 0.0 }
 0x17c   :  { %v844_v13 = vmax.f32 %v661_v36, 0.0  ;;  %v841_v36 = vmax.f32 %v2023_v9, 0.0 }
 0x17d   :  { %v688_v16 = vpop.f32.mrf.mxu0 }
 0x17e   :  { %v851_v54 = vmax.f32 %v688_v16, 0.0 }
 0x17f   :  { %v690_v24 = vpop.f32.mrf.mxu0 }
 0x180   :  { %1320 = vmatprep.subr.mxu1 %v851_v54  ;;  %v831_v54 = vmax.f32 %v1983_v6, 0.0 }
 0x181   :  { %1321 = vmatpush3.msra.mxu1 %v835_v59  ;;  %v2030_v39 = vpop.f32.mrf.mxu0 }
 0x182   :  { %1322 = vmatprep.subr.mxu1 %v850_v63  ;;  %v830_v63 = vmax.f32 %v1979_v2, 0.0  ;;  %v827_v2 = vmax.f32 %v1965_v53, 0.0  ;;  %v824_v53 = vmax.f32 %v1948_v33, 0.0  ;;  %v821_v33 = vmax.f32 %v1936_v21, 0.0 }
 0x183   :  { %1323 = vmatpush3.msra.mxu1 %v834_v28  ;;  %v695_v56 = vpop.f32.mrf.mxu0  ;;  %v840_v28 = vmax.f32 %v2019_v1, 0.0  ;;  %v882_v21 = vmax.f32 %v2021_v4, 0.0  ;;  %v864_v4 = vmax.f32 %v1942_v26, 0.0  ;;  %v876_v26 = vmax.f32 %v1997_v23, 0.0 }
 0x184   :  { %1324 = vmatprep.subr.mxu1 %v849_v43  ;;  %v823_v43 = vmax.f32 %v1944_v29, 0.0  ;;  %v837_v56 = vmax.f32 %v2007_v44, 0.0  ;;  %v820_v29 = vmax.f32 %v1932_v17, 0.0  ;;  %v867_v44 = vmax.f32 %v1954_v38, 0.0 }
 0x185   :  { %1325 = vmatpush3.msra.mxu1 %v833_v50  ;;  %v2034_v32 = vpop.f32.mrf.mxu0  ;;  %v838_v50 = vmax.f32 %v2011_v51, 0.0  ;;  %v902_v51 = vcombine.high %v1999_v31, %v1999_v31  ;;  %v880_v38 = vmax.f32 %v2013_v48, 0.0  ;;  %v877_v48 = vmax.f32 %v2001_v35, 0.0 }
 0x186   :  { %1326 = vmatprep.subr.mxu1 %v848_v0  ;;  %v873_v35 = vmax.f32 %v1985_v7, 0.0  ;;  %v872_v23 = vmax.f32 %v1981_v3, 0.0  ;;  %v853_v3 = vmax.f32 %v2034_v32, 0.0  ;;  %v1049_v32 = vld [vmem:[%s2189_s3 + $0x18] sm:$0xff] }
 0x187   :  { %1327 = vmatpush3.msra.mxu1 %v832_v8  ;;  %v698_v59 = vpop.f32.mrf.mxu0 }
 0x188   :  { %1328 = vmatprep.subr.mxu1 %v847_v47 }
 0x189   :  { %1329 = vmatpush3.msra.mxu1 %v831_v54  ;;  %v2038_v14 = vpop.f32.mrf.mxu0  ;;  %v881_v54 = vmax.f32 %v2017_v60, 0.0  ;;  %v878_v60 = vmax.f32 %v2005_v41, 0.0  ;;  %v874_v41 = vmax.f32 %v1989_v11, 0.0 }
 0x18a   :  { %1330 = vmatprep.subr.mxu1 %v846_v20  ;;  %v854_v7 = vmax.f32 %v2038_v14, 0.0  ;;  %v1050_v14 = vld [vmem:[%s2189_s3 + $0x20] sm:$0xff] }
 0x18b   :  { %1331 = vmatpush3.msra.mxu1 %v830_v63  ;;  %v703_v5 = vpop.f32.mrf.mxu0 }
 0x18c   :  { %1332 = vmatprep.subr.mxu1 %v845_v61 }
 0x18d   :  { %1333 = vmatpush3.msra.mxu1 %v829_v10  ;;  %v2042_v6 = vpop.f32.mrf.mxu0 }
 0x18e   :  { %1334 = vmatprep.subr.mxu1 %v844_v13  ;;  %v855_v11 = vmax.f32 %v2042_v6, 0.0  ;;  %v1632_v6 = vmov 0.0  }
 0x18f   :  { %1335 = vmatpush3.msra.mxu1 %v828_v55  ;;  %v706_v16 = vpop.f32.mrf.mxu0  ;;  %v871_v55 = vmax.f32 %v2195_v15, 0.0 }
 0x190   :  { %1336 = vmatprep.subr.mxu1 %v843_v49  ;;  %v2196_v49 = vld [vmem:[#allocation7_spill] sm:$0xff]  ;;  %v2197_v16 = vld [vmem:[#allocation6_spill] sm:$0xff] }
 0x191   :  { %1337 = vmatpush3.msra.mxu1 %v827_v2  ;;  %v2047_v24 = vpop.f32.mrf.mxu0  ;;  %v870_v2 = vmax.f32 %v2196_v49, 0.0 }
 0x192   :  { %1338 = vmatprep.subr.mxu1 %v842_v42  ;;  %v856_v13 = vmax.f32 %v2047_v24, 0.0  ;;  %v869_v42 = vmax.f32 %v2197_v16, 0.0 }
 0x193   :  { %1339 = vmatpush3.msra.mxu1 %v826_v62  ;;  %v711_v27 = vpop.f32.mrf.mxu0  ;;  %v2198_v62 = vld [vmem:[#allocation5_spill] sm:$0xff] }
 0x194   :  { %1340 = vmatprep.subr.mxu1 %v841_v36  ;;  %v868_v24 = vmax.f32 %v2198_v62, 0.0  ;;  %v852_v36 = vmax.f32 %v2030_v39, 0.0  ;;  %v1047_v39 = vld [vmem:[%s2189_s3 + $0x8] sm:$0xff] }
 0x195   :  { %1341 = vmatpush3.msra.mxu1 %v825_v58  ;;  %v2053_v19 = vpop.f32.mrf.mxu0 }
 0x196   :  { %1342 = vmatprep.subr.mxu1 %v840_v28  ;;  %v857_v5 = vmax.f32 %v2053_v19, 0.0 }
 0x197   :  { %1343 = vmatpush3.msra.mxu1 %v824_v53  ;;  %v714_v9 = vpop.f32.mrf.mxu0 }
 0x198   :  { %1344 = vmatprep.subr.mxu1 %v839_v46  ;;  %v1146_v9 = vld [vmem:[%s2189_s3 + $0xa0] sm:$0xff] }
 0x199   :  { %1345 = vmatpush3.msra.mxu1 %v823_v43  ;;  %v717_v1 = vpop.f32.mrf.mxu0 }
 0x19a   :  { %1346 = vmatprep.subr.mxu1 %v838_v50  ;;  %v858_v18 = vmax.f32 %v717_v1, 0.0  ;;  %v1145_v50 = vld [vmem:[%s2189_s3 + $0x98] sm:$0xff]  ;;  %v1143_v1 = vld [vmem:[%s2189_s3 + $0x88] sm:$0xff] }
 0x19b   :  { %1347 = vmatpush3.msra.mxu1 %v822_v37  ;;  %v719_v0 = vpop.f32.mrf.mxu0  ;;  %v1144_v37 = vld [vmem:[%s2189_s3 + $0x90] sm:$0xff] }
 0x19c   :  { %1348 = vmatprep.subr.mxu1 %v837_v56  ;;  %v1142_v56 = vld [vmem:[%s2189_s3 + $0x80] sm:$0xff]  ;;  %v1140_v0 = vld [vmem:[%s2189_s3 + $0x70] sm:$0xff] }
 0x19d   :  { %1349 = vmatpush3.msra.mxu1 %v821_v33  ;;  %v720_v8 = vpop.f32.mrf.mxu0  ;;  %v1141_v33 = vld [vmem:[%s2189_s3 + $0x78] sm:$0xff] }
 0x19e   :  { %1350 = vmatprep.subr.mxu1 %v836_v57  ;;  %v859_v10 = vmax.f32 %v720_v8, 0.0  ;;  %v1139_v57 = vld [vmem:[%s2189_s3 + $0x68] sm:$0xff]  ;;  %v1137_v8 = vld [vmem:[%s2189_s3 + $0x58] sm:$0xff] }
 0x19f   :  { %1351 = vmatpush3.msra.mxu1 %v820_v29  ;;  %v722_v47 = vpop.f32.mrf.mxu0  ;;  %v1138_v29 = vld [vmem:[%s2189_s3 + $0x60] sm:$0xff] }
 0x1a0   :  { %1355 = vmatprep.subr.mxu1 %v883_v25  ;;  %972 = vmatmul.mubr.f32.vlgmr.msra.gmra.mxu1 %v1963_v52  ;;  %v879_v52 = vmax.f32 %v2009_v45, 0.0  ;;  %v1135_v25 = vld [vmem:[%s2189_s3 + $0x48] sm:$0xff]  ;;  %v1133_v47 = vld [vmem:[%s2189_s3 + $0x38] sm:$0xff] }
 0x1a1   :  { %1356 = vmatpush3.msra.mxu1 %v867_v44  ;;  %v725_v17 = vpop.f32.mrf.mxu0  ;;  %1041 = vmatprep.mubr.f32.mxu1 %v902_v51  ;;  %v1136_v51 = vld [vmem:[%s2189_s3 + $0x50] sm:$0xff]  ;;  %v1134_v44 = vld [vmem:[%s2189_s3 + $0x40] sm:$0xff] }
 0x1a2   :  { %1357 = vmatprep.subr.mxu1 %v882_v21  ;;  %v860_v45 = vmax.f32 %v725_v17, 0.0  ;;  %v1132_v21 = vld [vmem:[%s2189_s3 + $0x30] sm:$0xff]  ;;  %v1317_v17 = vld [vmem:[%s2189_s3] ss:$0 sm:$0xff] }
 0x1a3   :  { %1358 = vmatpush3.msra.mxu1 %v866_v40  ;;  %v727_v59 = vpop.f32.mrf.mxu0  ;;  %v1131_v40 = vld [vmem:[%s2189_s3 + $0x28] sm:$0xff] }
 0x1a4   :  { %1359 = vmatprep.subr.mxu1 %v881_v54 }
 0x1a5   :  { %1360 = vmatpush3.msra.mxu1 %v865_v12  ;;  %v728_v20 = vpop.f32.mrf.mxu0 }
 0x1a6   :  { %1361 = vmatprep.subr.mxu1 %v880_v38  ;;  %v861_v61 = vmax.f32 %v728_v20, 0.0 }
 0x1a7   :  { %1362 = vmatpush3.msra.mxu1 %v864_v4  ;;  %v730_v63 = vpop.f32.mrf.mxu0  ;;  %v1319_v4 = vld [vmem:[%s2189_s3 + $0x1] ss:$0 sm:$0xff] }
 0x1a8   :  { %1363 = vmatprep.subr.mxu1 %v879_v52 }
 0x1a9   :  { %1364 = vmatpush3.msra.mxu1 %v863_v34 }
 0x1aa   :  { %1365 = vmatprep.subr.mxu1 %v878_v60 }
 0x1ab   :  { %1366 = vmatpush3.msra.mxu1 %v862_v30 }
 0x1ac   :  { %1367 = vmatprep.subr.mxu1 %v877_v48 }
 0x1ad   :  { %1368 = vmatpush3.msra.mxu1 %v861_v61 }
 0x1ae   :  { %1369 = vmatprep.subr.mxu1 %v876_v26 }
 0x1af   :  { %1370 = vmatpush3.msra.mxu1 %v860_v45 }
 0x1b0   :  { %1371 = vmatprep.subr.mxu1 %v875_v22 }
 0x1b1   :  { %1372 = vmatpush3.msra.mxu1 %v859_v10 }
 0x1b2   :  { %1373 = vmatprep.subr.mxu1 %v874_v41 }
 0x1b3   :  { %1374 = vmatpush3.msra.mxu1 %v858_v18 }
 0x1b4   :  { %1375 = vmatprep.subr.mxu1 %v873_v35 }
 0x1b5   :  { %1376 = vmatpush3.msra.mxu1 %v857_v5 }
 0x1b6   :  { %1377 = vmatprep.subr.mxu1 %v872_v23 }
 0x1b7   :  { %1378 = vmatpush3.msra.mxu1 %v856_v13 }
 0x1b8   :  { %1379 = vmatprep.subr.mxu1 %v871_v55 }
 0x1b9   :  { %1380 = vmatpush3.msra.mxu1 %v855_v11 }
 0x1ba   :  { %1381 = vmatprep.subr.mxu1 %v870_v2 }
 0x1bb   :  { %1382 = vmatpush3.msra.mxu1 %v854_v7 }
 0x1bc   :  { %1383 = vmatprep.subr.mxu1 %v869_v42 }
 0x1bd   :  { %1384 = vmatpush3.msra.mxu1 %v853_v3 }
 0x1be   :  { %1385 = vmatprep.subr.mxu1 %v868_v24 }
 0x1bf   :  { %1386 = vmatpush3.msra.mxu1 %v852_v36 }
 0x1c0   :  { %1042 = vmatmul.mubr.f32.vlgmr.msra.gmra.mxu1 %v1999_v31  ;;  %1412 = vmatprep.subr.mxu1 %v1632_v6  ;;  %v1048_v31 = vld [vmem:[%s2189_s3 + $0x10] sm:$0xff] }
 0x1c1   :  { %1413 = vmatpush3.msra.mxu1 %v1050_v14  ;;  %1420 = vmatprep.mubr.msk.f32.mxu1 %vm1633_vm0, %v1632_v6 }
 0x1c2   :  { %1414 = vmatprep.subr.mxu1 %v1632_v6 }
 0x1c3   :  { %1415 = vmatpush3.msra.mxu1 %v1049_v32 }
 0x1c4   :  { %1416 = vmatprep.subr.mxu1 %v1632_v6 }
 0x1c5   :  { %1417 = vmatpush3.msra.mxu1 %v1048_v31 }
 0x1c6   :  { %1418 = vmatprep.subr.mxu1 %v1632_v6 }
 0x1c7   :  { %1419 = vmatpush3.msra.mxu1 %v1047_v39 }
 0x1c8   :  { %1423 = vmatprep.subr.mxu1 %v1632_v6 }
 0x260   :  { %v1352_v58 = vpop.f32.mrf.mxu1 }
 0x262   :  { %v1353_v27 = vpop.f32.mrf.mxu1 }
 0x263   :  { %v1354_v19 = vadd.f32 %v1353_v27, %v1352_v58 }
 0x280   :  { %v1387_v28 = vpop.f32.mrf.mxu1 }
 0x282   :  { %v1388_v53 = vpop.f32.mrf.mxu1 }
 0x283   :  { %v1389_v46 = vadd.f32 %v1388_v53, %v1387_v28 }
 0x285   :  { %v1044_v43 = vadd.f32 %v1389_v46, %v1354_v19 }
 0x287   :  { %1421 = vmatmul.mubr.msk.f32.vlgmr.msra.gmra.mxu1 %vm1056_vm1, %v1044_v43 }
 0x288   :  { %1424 = vmatpush3.msra.mxu1 %v1146_v9  ;;  %1455 = vmatprep.mubr.msk.f32.mxu1 %vm1633_vm0, %v1632_v6 }
 0x289   :  { %1425 = vmatprep.subr.mxu1 %v1632_v6 }
 0x28a   :  { %1426 = vmatpush3.msra.mxu1 %v1145_v50 }
 0x28b   :  { %1427 = vmatprep.subr.mxu1 %v1632_v6 }
 0x28c   :  { %1428 = vmatpush3.msra.mxu1 %v1144_v37 }
 0x28d   :  { %1429 = vmatprep.subr.mxu1 %v1632_v6 }
 0x28e   :  { %1430 = vmatpush3.msra.mxu1 %v1143_v1 }
 0x28f   :  { %1431 = vmatprep.subr.mxu1 %v1632_v6 }
 0x290   :  { %1432 = vmatpush3.msra.mxu1 %v1142_v56 }
 0x291   :  { %1433 = vmatprep.subr.mxu1 %v1632_v6 }
 0x292   :  { %1434 = vmatpush3.msra.mxu1 %v1141_v33 }
 0x293   :  { %1435 = vmatprep.subr.mxu1 %v1632_v6 }
 0x294   :  { %1436 = vmatpush3.msra.mxu1 %v1140_v0 }
 0x295   :  { %1437 = vmatprep.subr.mxu1 %v1632_v6 }
 0x296   :  { %1438 = vmatpush3.msra.mxu1 %v1139_v57 }
 0x297   :  { %1439 = vmatprep.subr.mxu1 %v1632_v6 }
 0x298   :  { %1440 = vmatpush3.msra.mxu1 %v1138_v29 }
 0x299   :  { %1441 = vmatprep.subr.mxu1 %v1632_v6 }
 0x29a   :  { %1442 = vmatpush3.msra.mxu1 %v1137_v8 }
 0x29b   :  { %1443 = vmatprep.subr.mxu1 %v1632_v6 }
 0x29c   :  { %1444 = vmatpush3.msra.mxu1 %v1136_v51 }
 0x29d   :  { %1445 = vmatprep.subr.mxu1 %v1632_v6 }
 0x29e   :  { %1446 = vmatpush3.msra.mxu1 %v1135_v25 }
 0x29f   :  { %1447 = vmatprep.subr.mxu1 %v1632_v6 }
 0x2a0   :  { %1448 = vmatpush3.msra.mxu1 %v1134_v44 }
 0x2a1   :  { %1449 = vmatprep.subr.mxu1 %v1632_v6 }
 0x2a2   :  { %1450 = vmatpush3.msra.mxu1 %v1133_v47 }
 0x2a3   :  { %1451 = vmatprep.subr.mxu1 %v1632_v6 }
 0x2a4   :  { %1452 = vmatpush3.msra.mxu1 %v1132_v21 }
 0x2a5   :  { %1453 = vmatprep.subr.mxu1 %v1632_v6 }
 0x2a6   :  { %1454 = vmatpush3.msra.mxu1 %v1131_v40 }
 0x347   :  { %v1126_v54 = vpop.f32.mrf.mxu1 }
 0x348   :  { %v1127_v12 = vadd.f32 %v1317_v17, %v1126_v54 }
 0x349   :  { %v1422_v59 = vpop.f32.mrf.mxu1 }
 0x34a   :  { %v1130_v38 = vmax.f32 %v1127_v12, 0.0 }
 0x34c   :  { %1456 = vmatmul.mubr.f32.vlgmr.msra.gmra.mxu1 %v1130_v38 }
 0x40c   :  { %v1218_v20 = vpop.f32.mrf.mxu1 }
 0x40d   :  { %v1219_v52 = vadd.f32 %v1319_v4, %v1218_v20 }
 0x40e   :  { %v1457_v34 = vpop.f32.mrf.mxu1 }
 0x40f   :  { %1222 = vst [vmem:[#allocation2] sm:$0x3] %v1219_v52 }
 0x410   :  { %1619 = shalt.err (!%p1616_p4)
}
 0x411   :  { %1232 = dma.vmem_to_hbm [thread:$0]  %s1230_s30, 32, %s2190_s4, [#allocation3]  }
 0x412   :  { %1628 = dma.done.wait [#allocation3], 32  }
 0x413   :  { %1629 = vsyncadd [#allocation3], 4294967264 }
 0x414   :  { %1236 = vsyncpa [#allocation3], 1 }

</bundles_post_ra>
